<compile_context>
chip_gen: v6e
topology: v6e:2x2x1
jax: 0.10.0
libtpu: 0.0.40
codegen_flags: <defaults>
</compile_context>

<pallas_src>
import functools

import jax
import jax.numpy as jnp
from jax import lax
from jax.experimental import pallas as pl
from jax.experimental.pallas import tpu as pltpu


def _round_up(v, m):
    return ((v + m - 1) // m) * m


def _attention_core_kernel(x_ref, wqkv_ref, wp_ref, bias_ref, o_ref, *,
                           num_heads, head_dim, seq_len, dim, batch_block):
    """Everything between rfft and irfft for `batch_block` batches.

    Mirrors the module literally: fused q/k/v projection, the module's
    (B, N, dim) -> (B, H, N, hd) reshape head split, per-(batch, head)
    softmax(q k^T) v, transpose(1, 2) head recombination, output projection
    + bias (dropout = identity at p = 0).
    """
    bb, N, H, hd = batch_block, seq_len, num_heads, head_dim
    G = bb * H                                            # (batch, head) groups
    f2 = x_ref.shape[-1]
    f2_pad = wqkv_ref.shape[0]

    # Fused Q|K|V projection (attention scale and the cat(real, -imag) input
    # sign are folded into the weight).  Zero-pad the contraction dim
    # in-kernel so the MXU sees an aligned K = f2_pad; bf16 operands, f32 acc.
    x2 = x_ref[...].reshape(bb * N, f2).astype(jnp.bfloat16)
    if f2_pad > f2:
        x2 = jnp.concatenate(
            [x2, jnp.zeros((bb * N, f2_pad - f2), jnp.bfloat16)], axis=-1)
    qkv = jnp.dot(x2, wqkv_ref[...], preferred_element_type=jnp.float32)

    # Literal torch reshape (B, N, dim) -> (B, H, N, hd), flattened over
    # (batch, head): valid for any H / N / hd (no H == N assumption).
    q3 = qkv[:, 0 * dim:1 * dim].reshape(G, N, hd)
    k3 = qkv[:, 1 * dim:2 * dim].reshape(G, N, hd)
    v3 = qkv[:, 2 * dim:3 * dim].reshape(G, N, hd)

    # Per-(batch, head) scores; softmax over the N valid keys only.
    s = jnp.einsum("gqd,gkd->gqk", q3.astype(jnp.bfloat16),
                   k3.astype(jnp.bfloat16),
                   preferred_element_type=jnp.float32)        # (G, N, N) f32
    s = s - jnp.max(s, axis=-1, keepdims=True)
    p = jnp.exp(s)
    p = p / jnp.sum(p, axis=-1, keepdims=True)    # exact; not on binding slot

    ctx = jnp.einsum("gqk,gkd->gqd", p.astype(jnp.bfloat16),
                     v3.astype(jnp.bfloat16),
                     preferred_element_type=jnp.float32)      # (G, N, hd)

    # transpose(1, 2).reshape(B, N, C): small sublane relayout (XLU has slack).
    ctx = jnp.transpose(ctx.reshape(bb, H, N, hd), (0, 2, 1, 3))
    ctx = ctx.reshape(bb * N, dim)

    # Output projection + bias (the real / -img output sign is folded into
    # Wp and the bias), stored directly in the layout irfft wants.
    out = jnp.dot(ctx.astype(jnp.bfloat16), wp_ref[...],
                  preferred_element_type=jnp.float32) + bias_ref[...]
    o_ref[...] = out.reshape(bb, N, dim).astype(o_ref.dtype)


def prepare_attention_params(wq, wk, wv, wp, bp, *, num_heads):
    """One-time parameter transform:
      * fold the attention scale into Wq,
      * fold the input cat(real, -imag) sign into the second row-half of the
        fused weight, and the output stack([real, -img]) sign into the second
        column-half of Wp / bias,
      * fuse Q|K|V and zero-pad the contraction dim to a lane multiple,
      * store MXU weights as bf16 (f32 accumulation happens in-kernel).
    """
    f2, dim = wq.shape
    head_dim = dim // num_heads
    scale = head_dim ** -0.5
    f2_pad = _round_up(f2, 128)

    wqkv = jnp.concatenate([wq * scale, wk, wv], axis=-1)          # (f2, 3*dim)
    row_sign = jnp.concatenate(
        [jnp.ones((f2 // 2,)), -jnp.ones((f2 - f2 // 2,))])
    wqkv = wqkv * row_sign[:, None]
    wqkv = jnp.pad(wqkv, ((0, f2_pad - f2), (0, 0)))               # (f2p, 3*dim)

    half = dim // 2
    col_sign = jnp.concatenate([jnp.ones((half,)), -jnp.ones((dim - half,))])
    wp_s = wp * col_sign[None, :]
    bp_s = bp.reshape(1, dim) * col_sign[None, :]

    return (wqkv.astype(jnp.bfloat16), wp_s.astype(jnp.bfloat16),
            bp_s.astype(jnp.float32))


def _default_batch_block(batch, num_heads, seq_len):
    """Cap the per-step batch so bb*H*N stays around one MXU output tile of
    rows (128 on v5e, 256 on v6e/v7x) and keep >= 2 grid steps whenever B >= 2
    (pipeline overlap; one step per TensorCore on 2-TC / megacore parts).
    Never collapse all of B into a single step."""
    try:
        kind = jax.devices()[0].device_kind.lower()
    except Exception:
        kind = ""
    is_v5e = any(t in kind for t in ("v5 lite", "v5lite", "v5e"))
    r_target = 128 if is_v5e else 256
    cap = max(1, r_target // max(1, num_heads * seq_len))
    bb = max(1, min(cap, batch // 2 if batch >= 2 else 1))
    while batch % bb:
        bb -= 1
    return max(1, bb)


def attention_forward(x, wqkv, wp, bp, *, num_heads, batch_block=None):
    """JAX/Pallas equivalent of Attention.forward (dropout = identity at p=0).
    Parameters must come from `prepare_attention_params`."""
    B, N, C = x.shape
    dim = C
    head_dim = dim // num_heads
    f2 = 2 * (dim // 2 + 1)
    f2_pad = wqkv.shape[0]

    if batch_block is None:
        batch_block = _default_batch_block(B, num_heads, N)
    if B % batch_block:
        batch_block = 1
    bb = batch_block
    steps = B // bb
    G = bb * num_heads

    # --- glue: forward rFFT + real/imag split (the -imag sign is in wqkv) ---
    # TODO(synk): rfft/irfft computed in plain JAX (no Pallas TPU FFT primitive).
    xf = jnp.fft.rfft(x, norm="forward")                         # (B,N,C//2+1)
    xr = jnp.concatenate([jnp.real(xf), jnp.imag(xf)], axis=-1)  # (B, N, f2)

    kernel = functools.partial(
        _attention_core_kernel, num_heads=num_heads, head_dim=head_dim,
        seq_len=N, dim=dim, batch_block=bb)

    flops = steps * 2 * (bb * N * f2_pad * 3 * dim        # fused qkv matmul
                         + G * N * N * head_dim * 2       # scores + p @ v
                         + bb * N * dim * dim)            # output projection
    cost = pl.CostEstimate(
        flops=int(flops),
        transcendentals=int(steps * G * N * N),           # exp
        bytes_accessed=int(4 * B * N * f2 + 2 * (f2_pad * 3 * dim + dim * dim)
                           + 4 * dim + 4 * B * N * dim))

    y = pl.pallas_call(
        kernel,
        out_shape=jax.ShapeDtypeStruct((B, N, dim), jnp.float32),
        grid=(steps,),
        in_specs=[
            pl.BlockSpec((bb, N, f2), lambda b: (b, 0, 0)),        # xr slab
            pl.BlockSpec((f2_pad, 3 * dim), lambda b: (0, 0)),     # fused Wqkv
            pl.BlockSpec((dim, dim), lambda b: (0, 0)),            # Wproj
            pl.BlockSpec((1, dim), lambda b: (0, 0)),              # proj bias
        ],
        out_specs=pl.BlockSpec((bb, N, dim), lambda b: (b, 0, 0)),
        compiler_params=pltpu.CompilerParams(
            dimension_semantics=("parallel",)),
        cost_estimate=cost,
    )(xr, wqkv, wp, bp)

    # --- glue: complex re-assembly (signs already folded) + inverse rFFT ---
    half = dim // 2
    xc = lax.complex(y[..., :half], y[..., half:])
    return jnp.fft.irfft(xc, n=dim, norm="forward")               # (B, N, dim)


def reference_forward(x, wq, wk, wv, wp, bp, *, num_heads):
    """Pure-jnp mirror of the PyTorch forward, for correctness checking."""
    B, N, C = x.shape
    head_dim = C // num_heads
    scale = head_dim ** -0.5
    xf = jnp.fft.rfft(x, norm="forward")
    xr = jnp.concatenate([jnp.real(xf), -jnp.imag(xf)], axis=-1)
    q = (xr @ wq).reshape(B, num_heads, N, head_dim) * scale
    k = (xr @ wk).reshape(B, num_heads, N, head_dim)
    v = (xr @ wv).reshape(B, num_heads, N, head_dim)
    attn = jax.nn.softmax(q @ jnp.swapaxes(k, -2, -1), axis=-1)
    y = attn @ v
    y = jnp.swapaxes(y, 1, 2).reshape(B, N, C)
    y = y @ wp + bp
    half = C // 2
    xc = lax.complex(y[..., :half], -y[..., half:])
    return jnp.fft.irfft(xc, n=C, norm="forward")


if __name__ == "__main__":
    B, N, DIM, NUM_HEADS = 2, 8, 64, 8          # head_dim = 8, F2 = 66
    F2 = 2 * (DIM // 2 + 1)

    key = jax.random.PRNGKey(0)
    kx, kq, kk, kv, kp, kb = jax.random.split(key, 6)

    x = jax.random.normal(kx, (B, N, DIM), dtype=jnp.float32)

    # Deterministic parameter init (weights stored as (in, out), i.e. W.T of
    # torch).  qkv_bias=False -> q/k/v have no bias; proj (nn.Linear) has bias.
    wq = 0.05 * jax.random.normal(kq, (F2, DIM), dtype=jnp.float32)
    wk = 0.05 * jax.random.normal(kk, (F2, DIM), dtype=jnp.float32)
    wv = 0.05 * jax.random.normal(kv, (F2, DIM), dtype=jnp.float32)
    wp = 0.05 * jax.random.normal(kp, (DIM, DIM), dtype=jnp.float32)
    bp = 0.05 * jax.random.normal(kb, (1, DIM), dtype=jnp.float32)
    # Unused in forward(): self.qkv Linear and self.attn_bias (zeros (121,121,2)).
    _attn_bias = jnp.zeros((121, 121, 2), dtype=jnp.float32)

    # One-time parameter transform (scale/sign folds + QKV fuse + lane pad + bf16).
    wqkv, wp_p, bp_p = prepare_attention_params(wq, wk, wv, wp, bp,
                                                num_heads=NUM_HEADS)

    out = attention_forward(x, wqkv, wp_p, bp_p, num_heads=NUM_HEADS)
    out = jax.block_until_ready(out)

    ref = reference_forward(x, wq, wk, wv, wp, bp, num_heads=NUM_HEADS)
    assert out.shape == (B, N, DIM) and out.dtype == jnp.float32
    # bf16 MXU operands (f32 accumulation) per perf review -> tolerance is
    # relaxed vs. the all-f32 jnp reference.
    assert jnp.allclose(out, ref, atol=5e-3, rtol=5e-3), "mismatch vs jnp reference"

    print("KERNEL_OK")
</pallas_src>

<mosaic_0001>
module attributes {stable_mosaic.version = 11 : i64} {
  func.func @_attention_core_kernel(%arg0: i32, %arg1: memref<1x8x66xf32, #tpu.memory_space<vmem>>, %arg2: memref<128x192xbf16, #tpu.memory_space<vmem>>, %arg3: memref<64x64xbf16, #tpu.memory_space<vmem>>, %arg4: memref<1x64xf32, #tpu.memory_space<vmem>>, %arg5: memref<1x8x64xf32, #tpu.memory_space<vmem>>) attributes {dimension_semantics = [#tpu.dimension_semantics<parallel>], iteration_bounds = array<i64: 2>, scalar_prefetch = 0 : i64, scratch_operands = 0 : i64, tpu.core_type = #tpu.core_type<tc>, window_params = [{transform_indices = @transform_0, window_bounds = array<i64: 1, 8, 66>}, {pipeline_mode = #tpu.pipeline_mode<synchronous>, transform_indices = @transform_1, window_bounds = array<i64: 128, 192>}, {pipeline_mode = #tpu.pipeline_mode<synchronous>, transform_indices = @transform_2, window_bounds = array<i64: 64, 64>}, {pipeline_mode = #tpu.pipeline_mode<synchronous>, transform_indices = @transform_3, window_bounds = array<i64: 1, 64>}, {transform_indices = @transform_4, window_bounds = array<i64: 1, 8, 64>}]} {
    %c0 = arith.constant 0 : index
    %c0_0 = arith.constant 0 : index
    %c0_1 = arith.constant 0 : index
    %0 = vector.load %arg1[%c0, %c0_0, %c0_1] : memref<1x8x66xf32, #tpu.memory_space<vmem>>, vector<1x8x66xf32>
    %1 = vector.shape_cast %0 : vector<1x8x66xf32> to vector<8x66xf32>
    %2 = arith.truncf %1 : vector<8x66xf32> to vector<8x66xbf16>
    %cst = arith.constant 0.000000e+00 : bf16
    %3 = vector.broadcast %cst : bf16 to vector<8x62xbf16>
    %4 = tpu.concatenate %2, %3 in 1 : vector<8x66xbf16>, vector<8x62xbf16> -> vector<8x128xbf16>
    %c0_2 = arith.constant 0 : index
    %c0_3 = arith.constant 0 : index
    %5 = vector.load %arg2[%c0_2, %c0_3] : memref<128x192xbf16, #tpu.memory_space<vmem>>, vector<128x192xbf16>
    %cst_4 = arith.constant dense<0.000000e+00> : vector<8x192xf32>
    %6 = tpu.matmul %4, %5, %cst_4 {dimension_numbers = #tpu.dot_dimension_numbers<[1], [0], [0], [1], [0, 0, 1, 1], [], []>} : vector<8x128xbf16>, vector<128x192xbf16>, vector<8x192xf32> -> vector<8x192xf32>
    %7 = vector.extract_strided_slice %6 {offsets = [0, 0], sizes = [8, 64], strides = [1, 1]} : vector<8x192xf32> to vector<8x64xf32>
    %8 = vector.shape_cast %7 : vector<8x64xf32> to vector<8x8x8xf32>
    %9 = vector.extract_strided_slice %6 {offsets = [0, 64], sizes = [8, 64], strides = [1, 1]} : vector<8x192xf32> to vector<8x64xf32>
    %10 = vector.shape_cast %9 : vector<8x64xf32> to vector<8x8x8xf32>
    %11 = vector.extract_strided_slice %6 {offsets = [0, 128], sizes = [8, 64], strides = [1, 1]} : vector<8x192xf32> to vector<8x64xf32>
    %12 = vector.shape_cast %11 : vector<8x64xf32> to vector<8x8x8xf32>
    %13 = arith.truncf %8 : vector<8x8x8xf32> to vector<8x8x8xbf16>
    %14 = arith.truncf %10 : vector<8x8x8xf32> to vector<8x8x8xbf16>
    "tpu.trace_start"() <{level = 10 : i32, message = "gqd,gkd->gqk"}> : () -> ()
    %cst_5 = arith.constant dense<0.000000e+00> : vector<8x8x8xf32>
    %15 = tpu.matmul %13, %14, %cst_5 {dimension_numbers = #tpu.dot_dimension_numbers<[2], [2], [1], [1], [0, 0, 0, 1, 1, 1], [0], [0]>} : vector<8x8x8xbf16>, vector<8x8x8xbf16>, vector<8x8x8xf32> -> vector<8x8x8xf32>
    "tpu.trace_stop"() : () -> ()
    %cst_6 = arith.constant dense<0xFF800000> : vector<8x8xf32>
    %16 = vector.multi_reduction <maximumf>, %15, %cst_6 [2] : vector<8x8x8xf32> to vector<8x8xf32>
    %17 = vector.shape_cast %16 : vector<8x8xf32> to vector<8x8x1xf32>
    %18 = vector.broadcast %17 : vector<8x8x1xf32> to vector<8x8x8xf32>
    %19 = arith.subf %15, %18 : vector<8x8x8xf32>
    %20 = math.exp %19 : vector<8x8x8xf32>
    %cst_7 = arith.constant dense<0.000000e+00> : vector<8x8xf32>
    %21 = vector.multi_reduction <add>, %20, %cst_7 [2] : vector<8x8x8xf32> to vector<8x8xf32>
    %22 = vector.shape_cast %21 : vector<8x8xf32> to vector<8x8x1xf32>
    %23 = vector.broadcast %22 : vector<8x8x1xf32> to vector<8x8x8xf32>
    %24 = arith.divf %20, %23 : vector<8x8x8xf32>
    %25 = arith.truncf %24 : vector<8x8x8xf32> to vector<8x8x8xbf16>
    %26 = arith.truncf %12 : vector<8x8x8xf32> to vector<8x8x8xbf16>
    "tpu.trace_start"() <{level = 10 : i32, message = "gqk,gkd->gqd"}> : () -> ()
    %cst_8 = arith.constant dense<0.000000e+00> : vector<8x8x8xf32>
    %27 = tpu.matmul %25, %26, %cst_8 {dimension_numbers = #tpu.dot_dimension_numbers<[2], [1], [1], [2], [0, 0, 0, 1, 1, 2], [0], [0]>} : vector<8x8x8xbf16>, vector<8x8x8xbf16>, vector<8x8x8xf32> -> vector<8x8x8xf32>
    "tpu.trace_stop"() : () -> ()
    %28 = vector.shape_cast %27 : vector<8x8x8xf32> to vector<1x8x8x8xf32>
    %29 = tpu.transpose %28, [0, 2, 1, 3] : vector<1x8x8x8xf32> -> vector<1x8x8x8xf32>
    %30 = vector.shape_cast %29 : vector<1x8x8x8xf32> to vector<8x64xf32>
    %31 = arith.truncf %30 : vector<8x64xf32> to vector<8x64xbf16>
    %c0_9 = arith.constant 0 : index
    %c0_10 = arith.constant 0 : index
    %32 = vector.load %arg3[%c0_9, %c0_10] : memref<64x64xbf16, #tpu.memory_space<vmem>>, vector<64x64xbf16>
    %cst_11 = arith.constant dense<0.000000e+00> : vector<8x64xf32>
    %33 = tpu.matmul %31, %32, %cst_11 {dimension_numbers = #tpu.dot_dimension_numbers<[1], [0], [0], [1], [0, 0, 1, 1], [], []>} : vector<8x64xbf16>, vector<64x64xbf16>, vector<8x64xf32> -> vector<8x64xf32>
    %c0_12 = arith.constant 0 : index
    %c0_13 = arith.constant 0 : index
    %34 = vector.load %arg4[%c0_12, %c0_13] : memref<1x64xf32, #tpu.memory_space<vmem>>, vector<1x64xf32>
    %35 = vector.broadcast %34 : vector<1x64xf32> to vector<8x64xf32>
    %36 = arith.addf %33, %35 : vector<8x64xf32>
    %37 = vector.shape_cast %36 : vector<8x64xf32> to vector<1x8x64xf32>
    %c0_14 = arith.constant 0 : index
    %c0_15 = arith.constant 0 : index
    %c0_16 = arith.constant 0 : index
    %38 = vector.load %arg5[%c0_14, %c0_15, %c0_16] : memref<1x8x64xf32, #tpu.memory_space<vmem>>, vector<1x8x64xf32>
    tpu.vector_store %arg5[%c0_14, %c0_15, %c0_16], %37 {strides = array<i32>} : memref<1x8x64xf32, #tpu.memory_space<vmem>>, vector<1x8x64xf32>,
    return
  }
  func.func @transform_0(%arg0: i32) -> (i32, i32, i32) {
    %c0_i32 = arith.constant 0 : i32
    %c0_i32_0 = arith.constant 0 : i32
    %c0_i32_1 = arith.constant 0 : i32
    return %arg0, %c0_i32, %c0_i32_0 : i32, i32, i32
  }
  func.func @transform_1(%arg0: i32) -> (i32, i32) {
    %c0_i32 = arith.constant 0 : i32
    %c0_i32_0 = arith.constant 0 : i32
    %c0_i32_1 = arith.constant 0 : i32
    return %c0_i32, %c0_i32_0 : i32, i32
  }
  func.func @transform_2(%arg0: i32) -> (i32, i32) {
    %c0_i32 = arith.constant 0 : i32
    %c0_i32_0 = arith.constant 0 : i32
    %c0_i32_1 = arith.constant 0 : i32
    return %c0_i32, %c0_i32_0 : i32, i32
  }
  func.func @transform_3(%arg0: i32) -> (i32, i32) {
    %c0_i32 = arith.constant 0 : i32
    %c0_i32_0 = arith.constant 0 : i32
    %c0_i32_1 = arith.constant 0 : i32
    return %c0_i32, %c0_i32_0 : i32, i32
  }
  func.func @transform_4(%arg0: i32) -> (i32, i32, i32) {
    %c0_i32 = arith.constant 0 : i32
    %c0_i32_0 = arith.constant 0 : i32
    %c0_i32_1 = arith.constant 0 : i32
    return %arg0, %c0_i32, %c0_i32_0 : i32, i32, i32
  }
}

</mosaic_0001>

<bundles_post_ra>
// kernel: tpu_custom_call.1
= control target key start
LH: loop header
LB: loop body
LE: loop exit
PB: predicated region body
PF: predicated region fallthrough
CT: control target
= control target key end

     0   :  { %9 = vsyncpa [#allocation3], 0  ;;  %s3057_s0 = inlined_call_operand.vmem [shape: f32[2,8,66], index: 0, kind: input, shape index: {}]   ;;  %s3058_s1 = inlined_call_operand.vmem [shape: bf16[128,192], index: 1, kind: input, shape index: {}]   ;;  %s3059_s2 = inlined_call_operand.vmem [shape: bf16[64,64], index: 2, kind: input, shape index: {}]   ;;  %s3060_s3 = inlined_call_operand.vmem [shape: f32[1,64], index: 3, kind: input, shape index: {}]   ;;  %s3061_s4 = inlined_call_operand.hbm [shape: f32[2,8,64], index: 4, kind: output, shape index: {}]  }
   0x1   :  { %11 = vsyncpa [#allocation3 + $0x1], 0  ;;  %s2572_s15 = smov 0   ;;  %s2574_s16 = smov 0  }
   0x2   :  { %s2576_s17 = smov 0   ;;  %s2578_s18 = smov 0  }
   0x3 LB: > { %s2593_s19 = sadd.s32 4294967295, %s2524_s18   ;;  %s2143_s20 = sadd.s32 4294967294, %s2524_s18   ;;  %s2524_s18 = sphi %s2578_s18, %s3067_s18   ;;  %s2520_s17 = sphi %s2576_s17, %s3066_s17   ;;  %s2516_s16 = sphi %s2574_s16, %s3065_s16   ;;  %s2512_s15 = sphi %s2572_s15, %s3064_s15  }
   0x4   : > { %s2597_s21 = sadd.s32 1, %s2524_s18   ;;  %s113_s22 = sadd.s32 1, %s2520_s17 }
   0x5   : > { %s110_s23 = ssub.s32 %s2524_s18, %s2597_s21  ;;  %p123_p0 = scmp.ne.s32.totalorder %s2520_s17, %s2516_s16 }
   0x6   : > { %p111_p1 = scmp.eq.s32.totalorder %s110_s23, 0  ;;  %p124_p2 = scmp.eq.s32.totalorder %s2593_s19, 1 }
   0x7   : > { %p129_p3 = scmp.ne.s32.totalorder %s2516_s16, %s2512_s15  ;;  %p130_p4 = scmp.eq.s32.totalorder %s2143_s20, 1 }
   0x8   : > { %s2608_s24 = scalar_select %p111_p1, %s2520_s17, %s113_s22  }
   0x9   : > { %p2610_p5 = por %p124_p2, %p123_p0  ;;  %p2614_p6 = por %p130_p4, %p129_p3 }
   0xa   : > { %p2146_p7 = scmp.ge.s32.totalorder %s2524_s18, 1  ;;  %p164_p8 = scmp.lt.s32.totalorder %s2524_s18, 3 }
   0xc   : > { %p165_p9 = pnand %p2146_p7, %p164_p8 }
   0xd   : > { %p189_p10 = scmp.lt.s32.totalorder (!%p165_p9), %s2593_s19, 1  ;;  %s2527_s30 = smov (!%p165_p9), 104  }
   0xe   : > { %168 = sbr.rel (%p165_p9) target bundleno = 1643 (0x66b), region = 36  ;;  %s2528_s5 = smov (!%p165_p9), 120  }
   0xf   : > { %s2530_s7 = smov (!%p165_p9), 112   ;;  %s2531_s8 = smov (!%p165_p9), 80  }
  0x10   : > { %s2532_s9 = smov (!%p165_p9), 88   ;;  %s2533_s10 = smov (!%p165_p9), 64  }
  0x11   : > { %s2539_s22 = smov (!%p165_p9), 16   ;;  %s2540_s23 = smov (!%p165_p9), 8  }
  0x12   : > { %s2197_s14 = sshll.u32 (!%p165_p9), %s2593_s19, 7 }
  0x13   : > { %v2404_v0 = vld [vmem:[%s3058_s1 + $0x74] ss:$8 sps:$4 sm:$0xff]   ;;  %v2406_v1 = vld [vmem:[%s3058_s1 + $0x70] ss:$8 sps:$4 sm:$0xff]   ;;  %v2526_v2 = vmov 0   ;;  %s190_s6 = scalar_select %p189_p10, %s2593_s19, 1  ;;  %v365_v25 = vlaneseq }
  0x14   : > { %329 = vmatprep.mubr.bf16.mxu0 %v2526_v2  ;;  %297 = vmatprep.subr.bf16.mxu0 %v2404_v0  ;;  %v2407_v3 = vld [vmem:[%s3058_s1 + $0x64] ss:$8 sps:$4 sm:$0xff]   ;;  %v2409_v4 = vld [vmem:[%s3058_s1 + $0x60] ss:$8 sps:$4 sm:$0xff]   ;;  %v2410_v5 = vld [vmem:[%s3058_s1 + $0x54] ss:$8 sps:$4 sm:$0xff]   ;;  %s3016_s28 = scalar_lea.hbm %s3061_s4, %s2197_s14 }
  0x15   : > { %298 = vmatpush1.bf16.msra.mxu0 %v2406_v1  ;;  %v2412_v6 = vld [vmem:[%s3058_s1 + $0x50] ss:$8 sps:$4 sm:$0xff]   ;;  %v2413_v7 = vld [vmem:[%s3058_s1 + $0x44] ss:$8 sps:$4 sm:$0xff]   ;;  %v2415_v8 = vld [vmem:[%s3058_s1 + $0x40] ss:$8 sps:$4 sm:$0xff]  }
  0x16   : > { %299 = vmatprep.subr.bf16.mxu0 %v2407_v3  ;;  %v2416_v9 = vld [vmem:[%s3058_s1 + $0x34] ss:$8 sps:$4 sm:$0xff]   ;;  %v2418_v10 = vld [vmem:[%s3058_s1 + $0x30] ss:$8 sps:$4 sm:$0xff]   ;;  %v2419_v11 = vld [vmem:[%s3058_s1 + $0x24] ss:$8 sps:$4 sm:$0xff]  }
  0x17   : > { %v2421_v12 = vld [vmem:[%s3058_s1 + $0x20] ss:$8 sps:$4 sm:$0xff]   ;;  %v2422_v13 = vld [vmem:[%s3058_s1 + $0x14] ss:$8 sps:$4 sm:$0xff]   ;;  %s2148_s11 = sshll.u32 %s190_s6, 3  ;;  %vm196_vm0 = vcmask 539648  }
  0x18   : > { %v2424_v14 = vld [vmem:[%s3058_s1 + $0x10] ss:$8 sps:$4 sm:$0xff]   ;;  %v2425_v15 = vld [vmem:[%s3058_s1 + $0x4] ss:$8 sps:$4 sm:$0xff]   ;;  %s192_s27 = scalar_lea.vmem %s3057_s0, %s2148_s11  ;;  %v2427_v16 = vld [vmem:[%s3058_s1] ss:$8 sps:$4 sm:$0xff]  }
  0x19   : > { %300 = vmatpush1.bf16.msra.mxu0 %v2409_v4  ;;  %v194_v17 = vld [vmem:[%s192_s27] sm:$0xff]  ;;  %s2529_s6 = smov 96   ;;  %s2534_s11 = smov 72   ;;  %v2535_v23 = vmov 1983009808   ;;  %v366_v27 = vshrl.u32 %v365_v25, 7 }
  0x1a   : > { %301 = vmatprep.subr.bf16.mxu0 %v2410_v5  ;;  %v195_v18 = vpack.c.bf16 %v194_v17, %v194_v17  ;;  %v363_v24 = vunpack.c.l.s4 %v2535_v23  ;;  %v2536_v37 = vmov 1934713408   ;;  %v2537_v55 = vmov 0.0   ;;  %s2541_s27 = smov 24   ;;  %s2546_s19 = smov [#allocation2]  }
  0x1b   : > { %v427_v38 = vunpack.c.l.s4 %v2536_v37  ;;  %2237 = vmatprep.subr.bf16.mxu1 %v2537_v55  ;;  %vm2538_vm1 = vmmov 0   ;;  %vm830_vm2 = vcmask 64512   ;;  %vm1306_vm3 = vcmask 1043456  }
  0x1c   : > { %v364_v26 = vunpack.c.0.s8 %v363_v24  ;;  %2239 = vmatprep.mubr.msk.bf16.mxu1 %vm2538_vm1, %v2537_v55  ;;  %vm1973_vm4 = vcmask 130048   ;;  %vm1975_vm5 = vcmask 195584   ;;  %vm1977_vm6 = vcmask 261120  }
  0x1d   : > { %302 = vmatpush1.bf16.msra.mxu0 %v2412_v6  ;;  %v428_v49 = vunpack.c.0.s8 %v427_v38  ;;  %vm1979_vm7 = vcmask 326656   ;;  %vm1981_vm8 = vcmask 392192   ;;  %vm1983_vm9 = vcmask 457728  }
  0x1e   : > { %303 = vmatprep.subr.bf16.mxu0 %v2413_v7  ;;  %v2684_v32 = vsub.s32 %v364_v26, %v366_v27  ;;  %vm2025_vm10 = vcmask 523264  }
  0x1f   : > { %v2696_v56 = vsub.s32 %v428_v49, %v366_v27 }
  0x21   : > { %304 = vmatpush1.bf16.msra.mxu0 %v2415_v8 }
  0x22   : > { %305 = vmatprep.subr.bf16.mxu0 %v2416_v9 }
  0x25   : > { %306 = vmatpush1.bf16.msra.mxu0 %v2418_v10 }
  0x26   : > { %307 = vmatprep.subr.bf16.mxu0 %v2419_v11 }
  0x29   : > { %308 = vmatpush1.bf16.msra.mxu0 %v2421_v12 }
  0x2a   : > { %309 = vmatprep.subr.bf16.mxu0 %v2422_v13 }
  0x2d   : > { %310 = vmatpush1.bf16.msra.mxu0 %v2424_v14 }
  0x2e   : > { %311 = vmatprep.subr.bf16.mxu0 %v2425_v15 }
  0x31   : > { %312 = vmatpush1.bf16.msra.mxu0 %v2427_v16 }
  0x32   : > { %2273 = vmatprep.subr.bf16.mxu0 %v2537_v55 }
  0x34   : > { %2165 = vmatmul.mubr.msk.bf16.vlgmr.msra.gmra.mxu0 %vm196_vm0, %v195_v18 }
  0x35   : > { %2275 = vmatprep.mubr.msk.bf16.mxu0 %vm2538_vm1, %v2537_v55 }
  0xf4   : > { %v331_v19 = vpop.f32.mrf.mxu0 }
  0xf5   : > { %345 = vrot.lane.b32.xlu1 %v331_v19, %s2527_s30  ;;  %339 = vrot.lane.b32.xlu0 %v331_v19, %s2528_s5 }
  0xf6   : > { %v2675_v20 = vpop.f32.mrf.mxu0 }
  0xf8   : > { %v335_v21 = vpop.f32.mrf.mxu0 }
  0xf9   : > { %348 = vrot.lane.b32.xlu1 %v331_v19, %s2529_s6  ;;  %342 = vrot.lane.b32.xlu0 %v331_v19, %s2530_s7 }
  0xfa   : > { %v336_v22 = vpop.f32.mrf.mxu0 }
  0xfd   : > { %354 = vrot.lane.b32.xlu1 %v331_v19, %s2531_s8  ;;  %351 = vrot.lane.b32.xlu0 %v331_v19, %s2532_s9 }
 0x101   : > { %496 = vrot.lane.b32.xlu1 %v331_v19, %s2533_s10  ;;  %357 = vrot.lane.b32.xlu0 %v331_v19, %s2534_s11 }
 0x167   : > { %v346_v28 = vpop.permute.xlu1 %345  ;;  %v340_v29 = vpop.permute.xlu0 %339 }
 0x168   : > { %v376_v30 = vcombine.low %v340_v29, %v346_v28  ;;  %v377_v31 = vcombine.high %v340_v29, %v346_v28  ;;  %498 = vrot.lane.b32.xlu0 %v340_v29, %s2533_s10 }
 0x16a   : > { %v384_v39 = vrot.slane %v376_v30, %v2684_v32  ;;  %v391_v40 = vrot.slane %v377_v31, %v2684_v32 }
 0x16b   : > { %v349_v33 = vpop.permute.xlu1 %348  ;;  %v343_v34 = vpop.permute.xlu0 %342 }
 0x16c   : > { %v360_v35 = vcombine.low %v331_v19, %v343_v34  ;;  %v361_v36 = vcombine.high %v331_v19, %v343_v34  ;;  %502 = vrot.lane.b32.xlu0 %v346_v28, %s2533_s10  ;;  %500 = vrot.lane.b32.xlu1 %v343_v34, %s2533_s10 }
 0x16e   : > { %v368_v41 = vrot.slane %v360_v35, %v2684_v32  ;;  %v375_v42 = vrot.slane %v361_v36, %v2684_v32 }
 0x16f   : > { %v355_v43 = vpop.permute.xlu1 %354  ;;  %v352_v44 = vpop.permute.xlu0 %351 }
 0x170   : > { %v424_v45 = vcombine.low %v368_v41, %v384_v39  ;;  %v425_v46 = vcombine.high %v368_v41, %v384_v39  ;;  %v440_v47 = vcombine.low %v375_v42, %v391_v40  ;;  %v441_v48 = vcombine.high %v375_v42, %v391_v40  ;;  %504 = vrot.lane.b32.xlu1 %v349_v33, %s2533_s10 }
 0x171   : > { %v392_v50 = vcombine.low %v349_v33, %v355_v43  ;;  %v393_v51 = vcombine.high %v349_v33, %v355_v43  ;;  %506 = vrot.lane.b32.xlu0 %v352_v44, %s2533_s10 }
 0x172   : > { %v432_v1 = vrot.slane %v424_v45, %v2696_v56  ;;  %v439_v2 = vrot.slane %v425_v46, %v2696_v56  ;;  %v448_v3 = vrot.slane %v440_v47, %v2696_v56  ;;  %v455_v8 = vrot.slane %v441_v48, %v2696_v56 }
 0x173   : > { %v358_v52 = vpop.permute.xlu0 %357  ;;  %v400_v57 = vrot.slane %v392_v50, %v2684_v32  ;;  %v407_v58 = vrot.slane %v393_v51, %v2684_v32  ;;  %v497_v17 = vpop.permute.xlu1 %496 }
 0x174   : > { %v408_v53 = vcombine.low %v352_v44, %v358_v52  ;;  %v409_v54 = vcombine.high %v352_v44, %v358_v52  ;;  %508 = vrot.lane.b32.xlu1 %v355_v43, %s2533_s10 }
 0x175   : > { %510 = vrot.lane.b32.xlu0 %v358_v52, %s2533_s10  ;;  %s186_s10 = sand.u32 1, %s2516_s16  }
 0x176   : > { %v416_v59 = vrot.slane %v408_v53, %v2684_v32  ;;  %v423_v60 = vrot.slane %v409_v54, %v2684_v32  ;;  %s2071_s29 = scalar_lea.sflag [#allocation3], %s186_s10 }
 0x178   : > { %v456_v61 = vcombine.low %v400_v57, %v416_v59  ;;  %v457_v62 = vcombine.high %v400_v57, %v416_v59  ;;  %v472_v63 = vcombine.low %v407_v58, %v423_v60  ;;  %v473_v0 = vcombine.high %v407_v58, %v423_v60  ;;  %660 = vrot.lane.b32.xlu1 %v2675_v20, %s2530_s7  ;;  %s2543_s7 = smov 32  }
 0x179   : > { %657 = vrot.lane.b32.xlu0 %v2675_v20, %s2528_s5  ;;  %s2468_s5 = sshll.u32 %s2546_s19, 4  ;;  %s2469_s5 = int_to_ptr.vmem [resolvable:$false] %s2468_s5 }
 0x17a   : > { %v464_v4 = vrot.slane %v456_v61, %v2696_v56  ;;  %v471_v5 = vrot.slane %v457_v62, %v2696_v56  ;;  %v480_v6 = vrot.slane %v472_v63, %v2696_v56  ;;  %v487_v7 = vrot.slane %v473_v0, %v2696_v56 }
 0x17c   : > { %v2720_v9 = vcombine.high %v432_v1, %v464_v4  ;;  %v2722_v10 = vcombine.low %v439_v2, %v471_v5  ;;  %v2724_v11 = vcombine.high %v439_v2, %v471_v5  ;;  %v2726_v12 = vcombine.low %v448_v3, %v480_v6  ;;  %663 = vrot.lane.b32.xlu1 %v2675_v20, %s2527_s30 }
 0x17d   : > { %v2730_v13 = vcombine.high %v448_v3, %v480_v6  ;;  %v494_v14 = vcombine.low %v455_v8, %v487_v7  ;;  %v2732_v15 = vcombine.high %v455_v8, %v487_v7  ;;  %v488_v16 = vcombine.low %v432_v1, %v464_v4 }
 0x17e   : > { %v815_v6 = vpack.c.bf16 %v2720_v9, %v2720_v9  ;;  %v816_v9 = vpack.c.bf16 %v2722_v10, %v2722_v10 }
 0x17f   : > { %v814_v1 = vpack.c.bf16 %v488_v16, %v488_v16  ;;  %v820_v2 = vpack.c.bf16 %v494_v14, %v494_v14 }
 0x1da   : > { %v499_v18 = vpop.permute.xlu0 %498 }
 0x1de   : > { %v501_v19 = vpop.permute.xlu1 %500  ;;  %v503_v21 = vpop.permute.xlu0 %502 }
 0x1df   : > { %v520_v22 = vcombine.low %v497_v17, %v501_v19  ;;  %v521_v23 = vcombine.high %v497_v17, %v501_v19  ;;  %v536_v24 = vcombine.low %v499_v18, %v503_v21  ;;  %v537_v25 = vcombine.high %v499_v18, %v503_v21 }
 0x1e1   : > { %v528_v28 = vrot.slane %v520_v22, %v2684_v32  ;;  %v535_v29 = vrot.slane %v521_v23, %v2684_v32  ;;  %v544_v30 = vrot.slane %v536_v24, %v2684_v32  ;;  %v551_v31 = vrot.slane %v537_v25, %v2684_v32 }
 0x1e2   : > { %v505_v26 = vpop.permute.xlu1 %504  ;;  %v817_v24 = vpack.c.bf16 %v2724_v11, %v2724_v11 }
 0x1e3   : > { %v507_v27 = vpop.permute.xlu0 %506  ;;  %v584_v41 = vcombine.low %v528_v28, %v544_v30  ;;  %v601_v42 = vcombine.high %v535_v29, %v551_v31  ;;  %v585_v61 = vcombine.high %v528_v28, %v544_v30  ;;  %v600_v16 = vcombine.low %v535_v29, %v551_v31 }
 0x1e4   : > { %v819_v30 = vpack.c.bf16 %v2730_v13, %v2730_v13  ;;  %v821_v31 = vpack.c.bf16 %v2732_v15, %v2732_v15 }
 0x1e5   : > { %v2743_v47 = vrot.slane %v601_v42, %v2696_v56  ;;  %v592_v49 = vrot.slane %v584_v41, %v2696_v56  ;;  %v599_v0 = vrot.slane %v585_v61, %v2696_v56  ;;  %v608_v19 = vrot.slane %v600_v16, %v2696_v56 }
 0x1e6   : > { %v509_v33 = vpop.permute.xlu1 %508 }
 0x1e7   : > { %v552_v34 = vcombine.low %v505_v26, %v509_v33  ;;  %v553_v35 = vcombine.high %v505_v26, %v509_v33  ;;  %v511_v36 = vpop.permute.xlu0 %510 }
 0x1e8   : > { %v568_v37 = vcombine.low %v507_v27, %v511_v36  ;;  %v569_v38 = vcombine.high %v507_v27, %v511_v36  ;;  %v818_v27 = vpack.c.bf16 %v2726_v12, %v2726_v12 }
 0x1e9   : > { %v560_v39 = vrot.slane %v552_v34, %v2684_v32  ;;  %v567_v40 = vrot.slane %v553_v35, %v2684_v32 }
 0x1ea   : > { %v576_v43 = vrot.slane %v568_v37, %v2684_v32  ;;  %v583_v44 = vrot.slane %v569_v38, %v2684_v32 }
 0x1ec   : > { %v616_v45 = vcombine.low %v560_v39, %v576_v43  ;;  %v633_v46 = vcombine.high %v567_v40, %v583_v44  ;;  %v617_v57 = vcombine.high %v560_v39, %v576_v43  ;;  %v632_v7 = vcombine.low %v567_v40, %v583_v44 }
 0x1ee   : > { %v647_v48 = vrot.slane %v633_v46, %v2696_v56  ;;  %v624_v50 = vrot.slane %v616_v45, %v2696_v56  ;;  %v631_v62 = vrot.slane %v617_v57, %v2696_v56  ;;  %v640_v17 = vrot.slane %v632_v7, %v2696_v56 }
 0x1f0   : > { %v648_v51 = vcombine.low %v592_v49, %v624_v50  ;;  %v654_v52 = vcombine.low %v2743_v47, %v647_v48  ;;  %v649_v60 = vcombine.high %v592_v49, %v624_v50  ;;  %v650_v4 = vcombine.low %v599_v0, %v631_v62 }
 0x1f1   : > { %v651_v14 = vcombine.high %v599_v0, %v631_v62  ;;  %v652_v22 = vcombine.low %v608_v19, %v640_v17  ;;  %v653_v10 = vcombine.high %v608_v19, %v640_v17  ;;  %v655_v11 = vcombine.high %v2743_v47, %v647_v48  ;;  %v2825_v17 = vpop.permute.xlu0 %657 }
 0x1f2   : > { %v822_v53 = vpack.c.bf16 %v648_v51, %v648_v51  ;;  %v828_v54 = vpack.c.bf16 %v654_v52, %v654_v52  ;;  %v823_v63 = vpack.c.bf16 %v649_v60, %v649_v60  ;;  %v824_v5 = vpack.c.bf16 %v650_v4, %v650_v4 }
 0x1f3   : > { %v825_v18 = vpack.c.bf16 %v651_v14, %v651_v14  ;;  %v826_v23 = vpack.c.bf16 %v652_v22, %v652_v22  ;;  %v827_v26 = vpack.c.bf16 %v653_v10, %v653_v10  ;;  %v829_v29 = vpack.c.bf16 %v655_v11, %v655_v11  ;;  %v2821_v14 = vpop.permute.xlu1 %660 }
 0x1f4   : > { %v835_v58 = vsel %vm830_vm2, %v822_v53, 0  ;;  %v1111_v59 = vsel %vm830_vm2, %v828_v54, 0  ;;  %v881_v3 = vsel %vm830_vm2, %v823_v63, 0  ;;  %v927_v8 = vsel %vm830_vm2, %v824_v5, 0 }
 0x1f5   : > { %2238 = vmatpush3.bf16.xpose.msra.mxu1 %v835_v58  ;;  %2274 = vmatpush3.bf16.xpose.msra.mxu0 %v1111_v59  ;;  %v973_v21 = vsel %vm830_vm2, %v825_v18, 0  ;;  %v1019_v25 = vsel %vm830_vm2, %v826_v23, 0  ;;  %v1065_v28 = vsel %vm830_vm2, %v827_v26, 0  ;;  %v1157_v12 = vsel %vm830_vm2, %v829_v29, 0 }
 0x1f6   : > { %2243 = vmatprep.subr.bf16.mxu1 %v2537_v55  ;;  %2285 = vmatprep.subr.bf16.mxu0 %v2537_v55 }
 0x1f7   : > { %v2823_v16 = vpop.permute.xlu1 %663 }
 0x1fc   : > { %2240 = vmatmul.mubr.msk.bf16.vlgmr.msra.gmra.mxu1 %vm830_vm2, %v814_v1  ;;  %2276 = vmatmul.mubr.msk.bf16.vlgmr.msra.gmra.mxu0 %vm830_vm2, %v820_v2 }
 0x1fd   : > { %2244 = vmatpush3.bf16.xpose.msra.mxu1 %v881_v3  ;;  %2245 = vmatprep.mubr.msk.bf16.mxu1 %vm2538_vm1, %v2537_v55 }
 0x1fe   : > { %2249 = vmatprep.subr.bf16.mxu1 %v2537_v55  ;;  %2287 = vmatprep.mubr.msk.bf16.mxu0 %vm2538_vm1, %v2537_v55 }
 0x204   : > { %2246 = vmatmul.mubr.msk.bf16.vlgmr.msra.gmra.mxu1 %vm830_vm2, %v815_v6 }
 0x205   : > { %2250 = vmatpush3.bf16.xpose.msra.mxu1 %v927_v8  ;;  %2251 = vmatprep.mubr.msk.bf16.mxu1 %vm2538_vm1, %v2537_v55 }
 0x206   : > { %2255 = vmatprep.subr.bf16.mxu1 %v2537_v55 }
 0x20c   : > { %2252 = vmatmul.mubr.msk.bf16.vlgmr.msra.gmra.mxu1 %vm830_vm2, %v816_v9 }
 0x20d   : > { %2256 = vmatpush3.bf16.xpose.msra.mxu1 %v973_v21  ;;  %2257 = vmatprep.mubr.msk.bf16.mxu1 %vm2538_vm1, %v2537_v55 }
 0x20e   : > { %2261 = vmatprep.subr.bf16.mxu1 %v2537_v55 }
 0x214   : > { %2258 = vmatmul.mubr.msk.bf16.vlgmr.msra.gmra.mxu1 %vm830_vm2, %v817_v24 }
 0x215   : > { %2262 = vmatpush3.bf16.xpose.msra.mxu1 %v1019_v25  ;;  %2263 = vmatprep.mubr.msk.bf16.mxu1 %vm2538_vm1, %v2537_v55 }
 0x216   : > { %2267 = vmatprep.subr.bf16.mxu1 %v2537_v55 }
 0x21c   : > { %2264 = vmatmul.mubr.msk.bf16.vlgmr.msra.gmra.mxu1 %vm830_vm2, %v818_v27 }
 0x21d   : > { %2268 = vmatpush3.bf16.xpose.msra.mxu1 %v1065_v28  ;;  %2269 = vmatprep.mubr.msk.bf16.mxu1 %vm2538_vm1, %v2537_v55 }
 0x21e   : > { %2279 = vmatprep.subr.bf16.mxu1 %v2537_v55 }
 0x224   : > { %2270 = vmatmul.mubr.msk.bf16.vlgmr.msra.gmra.mxu1 %vm830_vm2, %v819_v30 }
 0x225   : > { %2280 = vmatpush3.bf16.xpose.msra.mxu1 %v1157_v12  ;;  %2281 = vmatprep.mubr.msk.bf16.mxu1 %vm2538_vm1, %v2537_v55 }
 0x226   : > { %2291 = vmatprep.subr.bf16.mxu1 %v2537_v55 }
 0x22c   : > { %2282 = vmatmul.mubr.msk.bf16.vlgmr.msra.gmra.mxu1 %vm830_vm2, %v821_v31 }
 0x22d   : > { %2293 = vmatprep.mubr.msk.bf16.mxu1 %vm2538_vm1, %v2537_v55 }
 0x2bc   : > { %v871_v33 = vpop.f32.mrf.mxu1  ;;  %v2806_v13 = vpop.f32.mrf.mxu0 }
 0x2bd   : > { %v1199_v34 = vsel %vm830_vm2, %v871_v33, -inf  ;;  %v1217_v36 = vsel %vm830_vm2, %v2806_v13, -inf }
 0x2be   : > { %v2241_v35 = vpop.f32.mrf.mxu1  ;;  %1200 = vmax.xlane.f32.xlu1 %v1199_v34  ;;  %1218 = vmax.xlane.f32.xlu0 %v1217_v36  ;;  %v2277_v37 = vpop.f32.mrf.mxu0 }
 0x2c0   : > { %v874_v38 = vpop.f32.mrf.mxu1  ;;  %v1150_v39 = vpop.f32.mrf.mxu0 }
 0x2c2   : > { %v2242_v15 = vpop.f32.mrf.mxu1  ;;  %v2278_v40 = vpop.f32.mrf.mxu0 }
 0x2c4   : > { %v917_v41 = vpop.f32.mrf.mxu1 }
 0x2c5   : > { %v1202_v42 = vsel %vm830_vm2, %v917_v41, -inf }
 0x2c6   : > { %v2247_v43 = vpop.f32.mrf.mxu1  ;;  %1203 = vmax.xlane.f32.xlu0 %v1202_v42 }
 0x2c8   : > { %v920_v44 = vpop.f32.mrf.mxu1 }
 0x2ca   : > { %v2248_v45 = vpop.f32.mrf.mxu1 }
 0x2cc   : > { %v963_v46 = vpop.f32.mrf.mxu1 }
 0x2cd   : > { %v1205_v47 = vsel %vm830_vm2, %v963_v46, -inf }
 0x2ce   : > { %v2253_v48 = vpop.f32.mrf.mxu1  ;;  %1206 = vmax.xlane.f32.xlu0 %v1205_v47 }
 0x2d0   : > { %v966_v49 = vpop.f32.mrf.mxu1 }
 0x2d2   : > { %v2254_v50 = vpop.f32.mrf.mxu1 }
 0x2d4   : > { %v1009_v51 = vpop.f32.mrf.mxu1 }
 0x2d5   : > { %v1208_v52 = vsel %vm830_vm2, %v1009_v51, -inf }
 0x2d6   : > { %v2259_v53 = vpop.f32.mrf.mxu1  ;;  %1209 = vmax.xlane.f32.xlu1 %v1208_v52 }
 0x2d8   : > { %v1012_v54 = vpop.f32.mrf.mxu1 }
 0x2da   : > { %v2260_v57 = vpop.f32.mrf.mxu1 }
 0x2dc   : > { %v1055_v58 = vpop.f32.mrf.mxu1 }
 0x2dd   : > { %v1211_v59 = vsel %vm830_vm2, %v1055_v58, -inf }
 0x2de   : > { %v2265_v60 = vpop.f32.mrf.mxu1  ;;  %1212 = vmax.xlane.f32.xlu0 %v1211_v59 }
 0x2e0   : > { %v1058_v61 = vpop.f32.mrf.mxu1 }
 0x2e1   : > { %v694_v61 = vcombine.low %v2825_v17, %v2823_v16 }
 0x2e2   : > { %v2266_v62 = vpop.f32.mrf.mxu1 }
 0x2e3   : > { %v678_v62 = vcombine.low %v2675_v20, %v2821_v14 }
 0x2e4   : > { %v1101_v63 = vpop.f32.mrf.mxu1 }
 0x2e5   : > { %v1214_v0 = vsel %vm830_vm2, %v1101_v63, -inf }
 0x2e6   : > { %v2271_v1 = vpop.f32.mrf.mxu1  ;;  %1215 = vmax.xlane.f32.xlu1 %v1214_v0 }
 0x2e7   : > { %v702_v1 = vrot.slane %v694_v61, %v2684_v32 }
 0x2e8   : > { %v1104_v2 = vpop.f32.mrf.mxu1 }
 0x2ea   : > { %v2272_v3 = vpop.f32.mrf.mxu1 }
 0x2eb   : > { %v686_v3 = vrot.slane %v678_v62, %v2684_v32 }
 0x2ec   : > { %v1193_v4 = vpop.f32.mrf.mxu1 }
 0x2ed   : > { %v1220_v5 = vsel %vm830_vm2, %v1193_v4, -inf }
 0x2ee   : > { %v2283_v6 = vpop.f32.mrf.mxu1  ;;  %1221 = vmax.xlane.f32.xlu1 %v1220_v5 }
 0x2f0   : > { %v1196_v7 = vpop.f32.mrf.mxu1 }
 0x2f1   : > { %v695_v7 = vcombine.high %v2825_v17, %v2823_v16 }
 0x2f2   : > { %v2284_v8 = vpop.f32.mrf.mxu1 }
 0x2f3   : > { %v742_v8 = vcombine.low %v686_v3, %v702_v1 }
 0x2f4   : > { %666 = vrot.lane.b32.xlu0 %v2675_v20, %s2529_s6  ;;  %s2542_s6 = smov 40  }
 0x2ff   : > { %669 = vrot.lane.b32.xlu1 %v2675_v20, %s2532_s9  ;;  %s2545_s9 = smov 48  }
 0x347   : > { %v1201_v18 = vpop.xlane.xlu1 %1200  ;;  %v1219_v21 = vpop.xlane.xlu0 %1218 }
 0x348   : > { %v1223_v19 = vsub.f32 %v871_v33, %v1201_v18  ;;  %v1229_v15 = vsub.f32 %v2806_v13, %v1219_v21 }
 0x34a   : > { %v1231_v9 = vmul.f32 1.442695, %v1223_v19  ;;  %v1243_v43 = vmul.f32 1.442695, %v1229_v15  ;;  %v743_v19 = vcombine.high %v686_v3, %v702_v1 }
 0x34c   : > { %2432 = vpow2.f32 %v1231_v9 }
 0x34f   : > { %v1204_v22 = vpop.xlane.xlu0 %1203 }
 0x350   : > { %v1224_v23 = vsub.f32 %v917_v41, %v1204_v22  ;;  %v679_v22 = vcombine.high %v2675_v20, %v2821_v14 }
 0x352   : > { %v1233_v24 = vmul.f32 1.442695, %v1224_v23 }
 0x354   : > { %2434 = vpow2.f32 %v1233_v24 }
 0x357   : > { %v1207_v25 = vpop.xlane.xlu0 %1206 }
 0x358   : > { %v1225_v10 = vsub.f32 %v963_v46, %v1207_v25 }
 0x359   : > { %v2827_v26 = vpop.eup %2432 }
 0x35a   : > { %v1235_v27 = vmul.f32 1.442695, %v1225_v10  ;;  %v1247_v28 = vsel %vm830_vm2, %v2827_v26, 0.0  ;;  %v2880_v10 = vrot.slane %v695_v7, %v2684_v32 }
 0x35b   : > { %1248 = vadd.xlane.f32.xlu0 %v1247_v28  ;;  %v757_v28 = vrot.slane %v743_v19, %v2696_v56 }
 0x35c   : > { %2436 = vpow2.f32 %v1235_v27  ;;  %v750_v27 = vrot.slane %v742_v8, %v2696_v56 }
 0x35f   : > { %v1210_v11 = vpop.xlane.xlu1 %1209 }
 0x360   : > { %v1226_v29 = vsub.f32 %v1009_v51, %v1210_v11 }
 0x361   : > { %v2831_v30 = vpop.eup %2434 }
 0x362   : > { %v1237_v12 = vmul.f32 1.442695, %v1226_v29  ;;  %v1250_v31 = vsel %vm830_vm2, %v2831_v30, 0.0  ;;  %v2890_v29 = vrot.slane %v679_v22, %v2684_v32 }
 0x363   : > { %1251 = vadd.xlane.f32.xlu1 %v1250_v31 }
 0x364   : > { %2438 = vpow2.f32 %v1237_v12 }
 0x367   : > { %v1213_v37 = vpop.xlane.xlu0 %1212 }
 0x368   : > { %v1227_v38 = vsub.f32 %v1055_v58, %v1213_v37 }
 0x369   : > { %v2835_v33 = vpop.eup %2436 }
 0x36a   : > { %v1253_v34 = vsel %vm830_vm2, %v2835_v33, 0.0  ;;  %v1239_v40 = vmul.f32 1.442695, %v1227_v38  ;;  %v758_v38 = vcombine.low %v2890_v29, %v2880_v10 }
 0x36b   : > { %1254 = vadd.xlane.f32.xlu0 %v1253_v34  ;;  %v667_v54 = vpop.permute.xlu0 %666 }
 0x36c   : > { %2440 = vpow2.f32 %v1239_v40 }
 0x36d   : > { %2442 = vpow2.f32 %v1243_v43 }
 0x36f   : > { %v1216_v39 = vpop.xlane.xlu1 %1215 }
 0x370   : > { %v1228_v42 = vsub.f32 %v1101_v63, %v1216_v39 }
 0x371   : > { %v2839_v35 = vpop.eup %2438 }
 0x372   : > { %v1256_v36 = vsel %vm830_vm2, %v2839_v35, 0.0  ;;  %v1241_v45 = vmul.f32 1.442695, %v1228_v42 }
 0x373   : > { %1257 = vadd.xlane.f32.xlu1 %v1256_v36 }
 0x374   : > { %2444 = vpow2.f32 %v1241_v45 }
 0x377   : > { %v1222_v41 = vpop.xlane.xlu1 %1221 }
 0x378   : > { %v1230_v44 = vsub.f32 %v1193_v4, %v1222_v41 }
 0x379   : > { %v2848_v47 = vpop.eup %2440 }
 0x37a   : > { %v1245_v46 = vmul.f32 1.442695, %v1230_v44  ;;  %v1259_v48 = vsel %vm830_vm2, %v2848_v47, 0.0  ;;  %v2852_v49 = vpop.eup %2442 }
 0x37b   : > { %v1265_v50 = vsel %vm830_vm2, %v2852_v49, 0.0  ;;  %v670_v58 = vpop.permute.xlu1 %669 }
 0x37c   : > { %2446 = vpow2.f32 %v1245_v46 }
 0x381   : > { %672 = vrot.lane.b32.xlu0 %v2675_v20, %s2531_s8  ;;  %v2854_v13 = vpop.eup %2444  ;;  %s2544_s8 = smov 56  }
 0x382   : > { %v1262_v52 = vsel %vm830_vm2, %v2854_v13, 0.0 }
 0x384   : > { %675 = vrot.lane.b32.xlu1 %v2675_v20, %s2534_s11  ;;  %s2147_s11 = sshll.u32 %s186_s10, 3 }
 0x385   : > { %s188_s20 = scalar_lea.vmem [#allocation2], %s2147_s11 }
 0x389   : > { %v2858_v51 = vpop.eup %2446 }
 0x38a   : > { %v1268_v53 = vsel %vm830_vm2, %v2858_v51, 0.0 }
 0x3a0   : > { %1260 = vadd.xlane.f32.xlu0 %v1259_v48 }
 0x3a4   : > { %1266 = vadd.xlane.f32.xlu0 %v1265_v50  ;;  %v766_v50 = vrot.slane %v758_v38, %v2696_v56 }
 0x3a8   : > { %1263 = vadd.xlane.f32.xlu1 %v1262_v52  ;;  %1269 = vadd.xlane.f32.xlu0 %v1268_v53 }
 0x3e4   : > { %v1249_v57 = vpop.xlane.xlu0 %1248 }
 0x3e5   : > { %2448 = vrcp.f32 %v1249_v57 }
 0x3ec   : > { %v1252_v60 = vpop.xlane.xlu1 %1251 }
 0x3ed   : > { %2450 = vrcp.f32 %v1252_v60 }
 0x3f2   : > { %v2449_v17 = vpop.eup %2448 }
 0x3f3   : > { %v1272_v40 = vmul.f32 %v2449_v17, %v2827_v26 }
 0x3f4   : > { %v1255_v59 = vpop.xlane.xlu0 %1254 }
 0x3f5   : > { %2452 = vrcp.f32 %v1255_v59  ;;  %v1287_v52 = vpack.c.bf16 %v1272_v40, %v1272_v40 }
 0x3f8   : > { %v673_v63 = vpop.permute.xlu0 %672 }
 0x3f9   : > { %v710_v2 = vcombine.low %v667_v54, %v673_v63  ;;  %v711_v18 = vcombine.high %v667_v54, %v673_v63 }
 0x3fa   : > { %v2451_v14 = vpop.eup %2450 }
 0x3fb   : > { %v718_v9 = vrot.slane %v710_v2, %v2684_v32  ;;  %v2883_v16 = vrot.slane %v711_v18, %v2684_v32  ;;  %v1274_v41 = vmul.f32 %v2451_v14, %v2831_v30 }
 0x3fc   : > { %v1258_v0 = vpop.xlane.xlu1 %1257 }
 0x3fd   : > { %2454 = vrcp.f32 %v1258_v0  ;;  %v1288_v53 = vpack.c.bf16 %v1274_v41, %v1274_v41 }
 0x400   : > { %v676_v4 = vpop.permute.xlu1 %675 }
 0x401   : > { %v726_v5 = vcombine.low %v670_v58, %v676_v4  ;;  %v727_v6 = vcombine.high %v670_v58, %v676_v4  ;;  %v759_v4 = vcombine.high %v2890_v29, %v2880_v10 }
 0x402   : > { %v2453_v48 = vpop.eup %2452 }
 0x403   : > { %v734_v21 = vrot.slane %v726_v5, %v2684_v32  ;;  %v2877_v23 = vrot.slane %v727_v6, %v2684_v32  ;;  %v1276_v59 = vmul.f32 %v2453_v48, %v2835_v33  ;;  %v773_v7 = vrot.slane %v759_v4, %v2696_v56 }
 0x405   : > { %v774_v24 = vcombine.low %v718_v9, %v734_v21  ;;  %v775_v25 = vcombine.high %v718_v9, %v734_v21  ;;  %v790_v12 = vcombine.low %v2883_v16, %v2877_v23  ;;  %v1289_v63 = vpack.c.bf16 %v1276_v59, %v1276_v59 }
 0x407   : > { %v782_v11 = vrot.slane %v774_v24, %v2696_v56  ;;  %v789_v20 = vrot.slane %v775_v25, %v2696_v56  ;;  %v798_v42 = vrot.slane %v790_v12, %v2696_v56 }
 0x409   : > { %v806_v31 = vcombine.low %v750_v27, %v782_v11  ;;  %v807_v34 = vcombine.high %v750_v27, %v782_v11  ;;  %v808_v36 = vcombine.low %v757_v28, %v789_v20  ;;  %v809_v37 = vcombine.high %v757_v28, %v789_v20 }
 0x40a   : > { %v2455_v26 = vpop.eup %2454  ;;  %v810_v57 = vcombine.low %v766_v50, %v798_v42  ;;  %v811_v58 = vcombine.high %v766_v50, %v798_v42 }
 0x40b   : > { %v1295_v39 = vpack.c.bf16 %v806_v31, %v806_v31  ;;  %v1296_v15 = vpack.c.bf16 %v807_v34, %v807_v34  ;;  %v1297_v45 = vpack.c.bf16 %v808_v36, %v808_v36  ;;  %v1298_v46 = vpack.c.bf16 %v809_v37, %v809_v37 }
 0x40c   : > { %v1278_v60 = vmul.f32 %v2455_v26, %v2839_v35  ;;  %v1299_v61 = vpack.c.bf16 %v810_v57, %v810_v57  ;;  %v1300_v62 = vpack.c.bf16 %v811_v58, %v811_v58  ;;  %v791_v35 = vcombine.high %v2883_v16, %v2877_v23 }
 0x40d   : > { %v1308_v43 = vsel %vm1306_vm3, %v1295_v39, 0  ;;  %v1354_v44 = vsel %vm1306_vm3, %v1296_v15, 0  ;;  %v1400_v30 = vsel %vm1306_vm3, %v1297_v45, 0  ;;  %v1446_v54 = vsel %vm1306_vm3, %v1298_v46, 0 }
 0x40e   : > { %2286 = vmatpush3.bf16.msra.mxu0 %v1308_v43  ;;  %2292 = vmatpush3.bf16.msra.mxu1 %v1354_v44  ;;  %v1290_v0 = vpack.c.bf16 %v1278_v60, %v1278_v60  ;;  %v1492_v1 = vsel %vm1306_vm3, %v1299_v61, 0  ;;  %v1538_v2 = vsel %vm1306_vm3, %v1300_v62, 0  ;;  %v805_v5 = vrot.slane %v791_v35, %v2696_v56  ;;  %v2428_v35 = vld [vmem:[%s3059_s2 + $0x18] sm:$0xff]  }
 0x40f   : > { %2297 = vmatprep.subr.bf16.mxu0 %v2537_v55  ;;  %2303 = vmatprep.subr.bf16.mxu1 %v2537_v55 }
 0x410   : > { %v812_v18 = vcombine.low %v773_v7, %v805_v5  ;;  %v813_v25 = vcombine.high %v773_v7, %v805_v5  ;;  %v2429_v7 = vld [vmem:[%s3059_s2 + $0x10] sm:$0xff]  }
 0x411   : > { %2288 = vmatmul.mubr.msk.bf16.vlgmr.msra.gmra.mxu0 %vm830_vm2, %v1287_v52  ;;  %2294 = vmatmul.mubr.msk.bf16.vlgmr.msra.gmra.mxu1 %vm830_vm2, %v1288_v53 }
 0x412   : > { %2298 = vmatpush3.bf16.msra.mxu0 %v1400_v30  ;;  %2304 = vmatpush3.bf16.msra.mxu1 %v1446_v54  ;;  %v1301_v21 = vpack.c.bf16 %v812_v18, %v812_v18 }
 0x413   : > { %2299 = vmatprep.mubr.msk.bf16.mxu0 %vm2538_vm1, %v2537_v55  ;;  %2305 = vmatprep.mubr.msk.bf16.mxu1 %vm2538_vm1, %v2537_v55 }
 0x414   : > { %2309 = vmatprep.subr.bf16.mxu0 %v2537_v55  ;;  %2315 = vmatprep.subr.bf16.mxu1 %v2537_v55  ;;  %v1584_v24 = vsel %vm1306_vm3, %v1301_v21, 0 }
 0x419   : > { %2300 = vmatmul.mubr.msk.bf16.vlgmr.msra.gmra.mxu0 %vm830_vm2, %v1289_v63  ;;  %2306 = vmatmul.mubr.msk.bf16.vlgmr.msra.gmra.mxu1 %vm830_vm2, %v1290_v0 }
 0x41a   : > { %2310 = vmatpush3.bf16.msra.mxu0 %v1492_v1  ;;  %2316 = vmatpush3.bf16.msra.mxu1 %v1538_v2 }
 0x41b   : > { %2311 = vmatprep.mubr.msk.bf16.mxu0 %vm2538_vm1, %v2537_v55  ;;  %2321 = vmatprep.subr.bf16.mxu0 %v2537_v55 }
 0x41c   : > { %2317 = vmatprep.mubr.msk.bf16.mxu1 %vm2538_vm1, %v2537_v55  ;;  %2327 = vmatprep.subr.bf16.mxu1 %v2537_v55 }
 0x429   : > { %v1261_v33 = vpop.xlane.xlu0 %1260 }
 0x42a   : > { %2456 = vrcp.f32 %v1261_v33 }
 0x42d   : > { %v1267_v3 = vpop.xlane.xlu0 %1266 }
 0x42e   : > { %2458 = vrcp.f32 %v1267_v3 }
 0x431   : > { %v1264_v6 = vpop.xlane.xlu1 %1263  ;;  %v1270_v8 = vpop.xlane.xlu0 %1269 }
 0x432   : > { %2460 = vrcp.f32 %v1264_v6 }
 0x433   : > { %2462 = vrcp.f32 %v1270_v8 }
 0x437   : > { %v2457_v19 = vpop.eup %2456 }
 0x438   : > { %v1280_v9 = vmul.f32 %v2457_v19, %v2848_v47  ;;  %v1302_v47 = vpack.c.bf16 %v813_v25, %v813_v25 }
 0x43a   : > { %v1291_v22 = vpack.c.bf16 %v1280_v9, %v1280_v9  ;;  %v1630_v20 = vsel %vm1306_vm3, %v1302_v47, 0 }
 0x43b   : > { %v2459_v23 = vpop.eup %2458 }
 0x43c   : > { %2312 = vmatmul.mubr.msk.bf16.vlgmr.msra.gmra.mxu0 %vm830_vm2, %v1291_v22  ;;  %v1284_v10 = vmul.f32 %v2459_v23, %v2852_v49 }
 0x43d   : > { %2322 = vmatpush3.bf16.msra.mxu0 %v1584_v24  ;;  %2323 = vmatprep.mubr.msk.bf16.mxu0 %vm2538_vm1, %v2537_v55 }
 0x43e   : > { %2333 = vmatprep.subr.bf16.mxu0 %v2537_v55  ;;  %v1293_v28 = vpack.c.bf16 %v1284_v10, %v1284_v10 }
 0x43f   : > { %v2461_v16 = vpop.eup %2460 }
 0x440   : > { %v1282_v17 = vmul.f32 %v2461_v16, %v2854_v13  ;;  %v2463_v11 = vpop.eup %2462 }
 0x441   : > { %v1286_v49 = vmul.f32 %v2463_v11, %v2858_v51 }
 0x442   : > { %v1292_v27 = vpack.c.bf16 %v1282_v17, %v1282_v17 }
 0x443   : > { %v1294_v13 = vpack.c.bf16 %v1286_v49, %v1286_v49 }
 0x444   : > { %2318 = vmatmul.mubr.msk.bf16.vlgmr.msra.gmra.mxu1 %vm830_vm2, %v1292_v27  ;;  %2324 = vmatmul.mubr.msk.bf16.vlgmr.msra.gmra.mxu0 %vm830_vm2, %v1293_v28 }
 0x445   : > { %2328 = vmatpush3.bf16.msra.mxu1 %v1630_v20  ;;  %2329 = vmatprep.mubr.msk.bf16.mxu1 %vm2538_vm1, %v2537_v55 }
 0x446   : > { %2341 = vmatprep.mubr.msk.bf16.mxu0 %vm2538_vm1, %v2537_v55  ;;  %2334 = vmatpush3.bf16.msra.mxu0 %v2428_v35 }
 0x447   : > { %2335 = vmatprep.subr.bf16.mxu0 %v2537_v55 }
 0x44a   : > { %2336 = vmatpush3.bf16.msra.mxu0 %v2429_v7 }
 0x44b   : > { %2337 = vmatprep.subr.bf16.mxu0 %v2537_v55 }
 0x44c   : > { %2330 = vmatmul.mubr.msk.bf16.vlgmr.msra.gmra.mxu1 %vm830_vm2, %v1294_v13 }
 0x4d1   : > { %v1344_v14 = vpop.f32.mrf.mxu0  ;;  %v1390_v29 = vpop.f32.mrf.mxu1 }
 0x4d3   : > { %v2289_v12 = vpop.f32.mrf.mxu0  ;;  %v2295_v31 = vpop.f32.mrf.mxu1 }
 0x4d5   : > { %v1347_v34 = vpop.f32.mrf.mxu0  ;;  %v1393_v36 = vpop.f32.mrf.mxu1 }
 0x4d7   : > { %v2290_v37 = vpop.f32.mrf.mxu0  ;;  %v2296_v38 = vpop.f32.mrf.mxu1 }
 0x4d9   : > { %v1436_v39 = vpop.f32.mrf.mxu0  ;;  %v1482_v15 = vpop.f32.mrf.mxu1 }
 0x4da   : > { %v1672_v40 = vcombine.low %v1344_v14, %v1436_v39  ;;  %v1673_v41 = vcombine.high %v1344_v14, %v1436_v39  ;;  %v1688_v42 = vcombine.low %v1390_v29, %v1482_v15  ;;  %v1689_v51 = vcombine.high %v1390_v29, %v1482_v15 }
 0x4db   : > { %v2301_v43 = vpop.f32.mrf.mxu0  ;;  %v2307_v44 = vpop.f32.mrf.mxu1 }
 0x4dc   : > { %v1680_v45 = vrot.slane %v1672_v40, %v2684_v32  ;;  %v1687_v46 = vrot.slane %v1673_v41, %v2684_v32  ;;  %v1696_v48 = vrot.slane %v1688_v42, %v2684_v32  ;;  %v1703_v50 = vrot.slane %v1689_v51, %v2684_v32 }
 0x4dd   : > { %v1439_v52 = vpop.f32.mrf.mxu0  ;;  %v1485_v53 = vpop.f32.mrf.mxu1 }
 0x4de   : > { %v1736_v26 = vcombine.low %v1680_v45, %v1696_v48  ;;  %v1737_v30 = vcombine.high %v1680_v45, %v1696_v48  ;;  %v1752_v54 = vcombine.low %v1687_v46, %v1703_v50  ;;  %v1753_v57 = vcombine.high %v1687_v46, %v1703_v50  ;;  %v2430_v53 = vld [vmem:[%s3059_s2 + $0x8] sm:$0xff]  }
 0x4df   : > { %v2302_v58 = vpop.f32.mrf.mxu0  ;;  %v2308_v59 = vpop.f32.mrf.mxu1  ;;  %2338 = vmatpush3.bf16.msra.mxu0 %v2430_v53 }
 0x4e0   : > { %v1744_v60 = vrot.slane %v1736_v26, %v2696_v56  ;;  %v1751_v61 = vrot.slane %v1737_v30, %v2696_v56  ;;  %v1760_v62 = vrot.slane %v1752_v54, %v2696_v56  ;;  %v1767_v63 = vrot.slane %v1753_v57, %v2696_v56  ;;  %2339 = vmatprep.subr.bf16.mxu0 %v2537_v55 }
 0x4e2   : > { %v2182_v0 = vcombine.low %v1744_v60, %v1751_v61  ;;  %v2184_v1 = vcombine.high %v1744_v60, %v1751_v61  ;;  %v2186_v2 = vcombine.low %v1760_v62, %v1767_v63  ;;  %v2188_v33 = vcombine.high %v1760_v62, %v1767_v63 }
 0x4e4   : > { %v1816_v3 = vrot.slane %v2182_v0, %v2684_v32  ;;  %v1832_v4 = vrot.slane %v2184_v1, %v2684_v32  ;;  %v1848_v5 = vrot.slane %v2186_v2, %v2684_v32  ;;  %v1864_v6 = vrot.slane %v2188_v33, %v2684_v32  ;;  %v2431_v2 = vld [vmem:[%s3059_s2] sm:$0xff]  }
 0x4e5   : > { %2340 = vmatpush3.bf16.msra.mxu0 %v2431_v2 }
 0x4e6   : > { %v1873_v8 = vcombine.high %v1816_v3, %v1832_v4  ;;  %v1905_v18 = vcombine.high %v1848_v5, %v1864_v6  ;;  %v1872_v19 = vcombine.low %v1816_v3, %v1832_v4  ;;  %v1904_v9 = vcombine.low %v1848_v5, %v1864_v6 }
 0x4e8   : > { %v1887_v21 = vrot.slane %v1873_v8, %v2696_v56  ;;  %v1919_v22 = vrot.slane %v1905_v18, %v2696_v56  ;;  %v2971_v23 = vrot.slane %v1872_v19, %v2696_v56  ;;  %v2974_v24 = vrot.slane %v1904_v9, %v2696_v56 }
 0x4ea   : > { %v1938_v25 = vcombine.low %v1887_v21, %v1919_v22  ;;  %v1937_v10 = vcombine.high %v2971_v23, %v2974_v24  ;;  %v1936_v16 = vcombine.low %v2971_v23, %v2974_v24  ;;  %v1939_v17 = vcombine.high %v1887_v21, %v1919_v22 }
 0x4ec   : > { %1949 = vrot.lane.b32.xlu0 %v1938_v25, %s2539_s22  ;;  %1945 = vrot.lane.b32.xlu1 %v1937_v10, %s2540_s23  ;;  %s2084_s22 = sshll.u32 %s188_s20, 4  ;;  %s3018_s22 = int_to_ptr.vmem [resolvable:$true] %s2084_s22 }
 0x4ed   : > { %s2464_s30 = scalar_lea.vmem %s3018_s22, 128  ;;  %p2471_p0 = scmp.lt.s32.totalorder %s3018_s22, %s2469_s5 }
 0x4ee   : > { %p2465_p11 = scmp.ne.s32.totalorder %s3018_s22, %s2464_s30 }
 0x4f0   : > { %1953 = vrot.lane.b32.xlu1 %v1939_v17, %s2541_s27  ;;  %p2466_p12 = pnand %p2465_p11, %p2610_p5 }
 0x4f2   : > { %p2467_p13 = pneg %p2466_p12 }
 0x4fc   : > { %v1528_v47 = vpop.f32.mrf.mxu0 }
 0x4fe   : > { %v2313_v27 = vpop.f32.mrf.mxu0 }
 0x500   : > { %v1531_v28 = vpop.f32.mrf.mxu0 }
 0x502   : > { %v2314_v11 = vpop.f32.mrf.mxu0 }
 0x504   : > { %v1574_v20 = vpop.f32.mrf.mxu1  ;;  %v1620_v49 = vpop.f32.mrf.mxu0 }
 0x505   : > { %v1704_v36 = vcombine.low %v1528_v47, %v1620_v49  ;;  %v1705_v37 = vcombine.high %v1528_v47, %v1620_v49  ;;  %v2190_v49 = vld [vmem:[%s3060_s3] ss:$0 sm:$0xff] }
 0x506   : > { %v2319_v13 = vpop.f32.mrf.mxu1  ;;  %v2325_v14 = vpop.f32.mrf.mxu0 }
 0x507   : > { %v1712_v41 = vrot.slane %v1704_v36, %v2684_v32  ;;  %v1719_v42 = vrot.slane %v1705_v37, %v2684_v32 }
 0x508   : > { %v1577_v29 = vpop.f32.mrf.mxu1  ;;  %v1623_v12 = vpop.f32.mrf.mxu0 }
 0x50a   : > { %v2320_v31 = vpop.f32.mrf.mxu1  ;;  %v2326_v34 = vpop.f32.mrf.mxu0 }
 0x50c   : > { %v1666_v38 = vpop.f32.mrf.mxu1 }
 0x50d   : > { %v1720_v39 = vcombine.low %v1574_v20, %v1666_v38  ;;  %v1721_v15 = vcombine.high %v1574_v20, %v1666_v38 }
 0x50e   : > { %v2331_v40 = vpop.f32.mrf.mxu1 }
 0x50f   : > { %v1728_v51 = vrot.slane %v1720_v39, %v2684_v32  ;;  %v1735_v43 = vrot.slane %v1721_v15, %v2684_v32 }
 0x510   : > { %v1669_v44 = vpop.f32.mrf.mxu1 }
 0x511   : > { %v1768_v45 = vcombine.low %v1712_v41, %v1728_v51  ;;  %v1769_v46 = vcombine.high %v1712_v41, %v1728_v51  ;;  %v1784_v48 = vcombine.low %v1719_v42, %v1735_v43  ;;  %v1785_v50 = vcombine.high %v1719_v42, %v1735_v43 }
 0x512   : > { %v2332_v52 = vpop.f32.mrf.mxu1 }
 0x513   : > { %v1776_v26 = vrot.slane %v1768_v45, %v2696_v56  ;;  %v1783_v30 = vrot.slane %v1769_v46, %v2696_v56  ;;  %v1792_v54 = vrot.slane %v1784_v48, %v2696_v56  ;;  %v1799_v57 = vrot.slane %v1785_v50, %v2696_v56 }
 0x515   : > { %v2183_v58 = vcombine.low %v1776_v26, %v1783_v30  ;;  %v2185_v59 = vcombine.high %v1776_v26, %v1783_v30  ;;  %v2187_v60 = vcombine.low %v1792_v54, %v1799_v57  ;;  %v2189_v61 = vcombine.high %v1792_v54, %v1799_v57 }
 0x517   : > { %v1823_v62 = vrot.slane %v2183_v58, %v2684_v32  ;;  %v1839_v63 = vrot.slane %v2185_v59, %v2684_v32  ;;  %v1855_v0 = vrot.slane %v2187_v60, %v2684_v32  ;;  %v1871_v1 = vrot.slane %v2189_v61, %v2684_v32 }
 0x519   : > { %v1888_v33 = vcombine.low %v1823_v62, %v1839_v63  ;;  %v1920_v35 = vcombine.low %v1855_v0, %v1871_v1  ;;  %v1889_v3 = vcombine.high %v1823_v62, %v1839_v63  ;;  %v1921_v4 = vcombine.high %v1855_v0, %v1871_v1 }
 0x51b   : > { %v1896_v5 = vrot.slane %v1888_v33, %v2696_v56  ;;  %v1928_v55 = vrot.slane %v1920_v35, %v2696_v56  ;;  %v1903_v8 = vrot.slane %v1889_v3, %v2696_v56  ;;  %v1935_v18 = vrot.slane %v1921_v4, %v2696_v56 }
 0x51d   : > { %v1941_v6 = vcombine.high %v1896_v5, %v1928_v55  ;;  %v1940_v7 = vcombine.low %v1896_v5, %v1928_v55  ;;  %v1943_v32 = vcombine.high %v1903_v8, %v1935_v18  ;;  %v1942_v19 = vcombine.low %v1903_v8, %v1935_v18 }
 0x51f   : > { %1961 = vrot.lane.b32.xlu0 %v1941_v6, %s2542_s6  ;;  %1957 = vrot.lane.b32.xlu1 %v1940_v7, %s2543_s7  ;;  %s2470_s6 = scalar_lea.vmem %s2469_s5, 256 }
 0x520   : > { %p2472_p1 = scmp.lt.s32.totalorder %s2470_s6, %s2464_s30 }
 0x522   : > { %p2473_p2 = por %p2472_p1, %p2471_p0 }
 0x523   : > { %1969 = vrot.lane.b32.xlu0 %v1943_v32, %s2544_s8  ;;  %1965 = vrot.lane.b32.xlu1 %v1942_v19, %s2545_s9 }
 0x524   : > { %p2474_p3 = pnand %p2473_p2, %p2467_p13 }
 0x55e   : > { %v1946_v9 = vpop.permute.xlu1 %1945  ;;  %v1950_v21 = vpop.permute.xlu0 %1949 }
 0x55f   : > { %v1972_v22 = vsel %vm830_vm2, %v1936_v16, %v1946_v9 }
 0x560   : > { %v1974_v56 = vsel %vm1973_vm4, %v1972_v22, %v1950_v21 }
 0x562   : > { %v1954_v25 = vpop.permute.xlu1 %1953 }
 0x563   : > { %v1976_v10 = vsel %vm1975_vm5, %v1974_v56, %v1954_v25 }
 0x591   : > { %v1962_v17 = vpop.permute.xlu0 %1961  ;;  %v1958_v47 = vpop.permute.xlu1 %1957 }
 0x592   : > { %v1978_v27 = vsel %vm1977_vm6, %v1976_v10, %v1958_v47 }
 0x593   : > { %v1980_v11 = vsel %vm1979_vm7, %v1978_v27, %v1962_v17 }
 0x595   : > { %v1970_v28 = vpop.permute.xlu0 %1969  ;;  %v1966_v20 = vpop.permute.xlu1 %1965 }
 0x596   : > { %v1982_v23 = vsel %vm1981_vm8, %v1980_v11, %v1966_v20 }
 0x597   : > { %v1984_v24 = vsel %vm1983_vm9, %v1982_v23, %v1970_v28 }
 0x598   : > { %v1985_v16 = vpack.c.bf16 %v1984_v24, %v1984_v24 }
 0x59a   : > { %2342 = vmatmul.mubr.msk.bf16.vlgmr.msra.gmra.mxu0 %vm2025_vm10, %v1985_v16 }
 0x65a   : > { %v2063_v13 = vpop.f32.mrf.mxu0 }
 0x65b   : > { %v2064_v14 = vadd.f32 %v2190_v49, %v2063_v13 }
 0x65c   : > { %v2343_v29 = vpop.f32.mrf.mxu0 }
 0x65d   : > { %2069 = vst.msk [vmem:[%s188_s20] sm:$0xff] %vm2025_vm10, %v2064_v14 }
 0x65e   : > { %v2066_v12 = vpop.f32.mrf.mxu0 }
 0x65f   : > { %2477 = shalt.err (!%p2474_p3)
}
 0x660   : > { %s2478_s7 = scalar_lea.hbm %s3016_s28, 128  ;;  %s2482_s10 = scalar_lea.hbm %s3061_s4, 256 }
 0x661   : > { %p2479_p4 = scmp.ne.s32.totalorder %s3016_s28, %s2478_s7  ;;  %p2483_p9 = scmp.lt.s32.totalorder %s3016_s28, %s3061_s4 }
 0x662   : > { %p2484_p10 = scmp.lt.s32.totalorder %s2482_s10, %s2478_s7 }
 0x663   : > { %p2480_p7 = pnand %p2479_p4, %p2610_p5 }
 0x664   : > { %p2485_p11 = por %p2484_p10, %p2483_p9 }
 0x665   : > { %p2481_p8 = pneg %p2480_p7 }
 0x667   : > { %p2486_p12 = pnand %p2485_p11, %p2481_p8 }
 0x669   : > { %2489 = shalt.err (!%p2486_p12)
}
 0x66a   : > { %2345 = dma.vmem_to_hbm [thread:$0]  (%p2610_p5), %s3018_s22, 128, %s3016_s28, %s2071_s29   ;;  %v2344_v31 = vpop.f32.mrf.mxu0 }
 0x66b PF: > { %p2351_p13 = scmp.ge.s32.totalorder %s2524_s18, 2  ;;  %s2096_s13 = sand.u32 1, %s2512_s15  }
 0x66c   : > { %s2097_s14 = scalar_lea.sflag [#allocation3], %s2096_s13 }
 0x66d   : > { %p2348_p0 = pnand %p2351_p13, %p2614_p6 }
 0x66f   : > { %p2349_p1 = pneg %p2348_p0 }
 0x671   : > { %2507 = dma.done.wait (%p2349_p1), %s2097_s14, 128  }
 0x672   : > { %2509 = vsyncadd (%p2349_p1), %s2097_s14, 4294967168  ;;  %p14_p2 = scmp.ge.s32.totalorder %s2597_s21, 4   ;;  %s3064_s15 = smov %s2516_s16 }
 0x673   : > { %s3065_s16 = smov %s2520_s17  ;;  %s3066_s17 = smov %s2608_s24 }
 0x674   : > { %s3067_s18 = smov %s2597_s21  ;;  %16 = sbr.rel (!%p14_p2) target bundleno = 3 (0x3), region = 71 }
 0x679   :  { %2102 = vsyncpa [#allocation3], 1 }
 0x67a   :  { %2104 = vsyncpa [#allocation3 + $0x1], 1 }

</bundles_post_ra>
